<compile_context>
chip_gen: v7x
topology: tpu7x:2x2x1
jax: 0.10.0
libtpu: 0.0.40
codegen_flags: <defaults>
</compile_context>

<pallas_src>
import jax
import jax.numpy as jnp
from jax.experimental import pallas as pl
from jax.experimental.pallas import tpu as pltpu


def _round_up(x, m):
    return (x + m - 1) // m * m


def _mlp_kernel(cls_ref, ind_ref, outd_ref, len_ref,
                w0h_ref, w0i_ref, w0o_ref, w0l_ref, b0_ref,
                w1_ref, b1_ref, w2_ref, b2_ref, o_ref):
    """Fused MLP head on one batch tile.

    Layer 0 is the fused "concat(CLS, in_deg, out_deg, len) @ W0" computed as
    four partial matmuls over the row-split of W0 (identical math, no concat).
    MXU inputs are bf16; accumulation and the bias/ReLU epilogue are f32.
    Dropout layers are identity (eval mode).
    """
    bf16 = jnp.bfloat16

    h0 = jnp.dot(cls_ref[...].astype(bf16), w0h_ref[...],
                 preferred_element_type=jnp.float32)
    h0 += jnp.dot(ind_ref[...].astype(bf16), w0i_ref[...],
                  preferred_element_type=jnp.float32)
    h0 += jnp.dot(outd_ref[...].astype(bf16), w0o_ref[...],
                  preferred_element_type=jnp.float32)
    h0 += jnp.dot(len_ref[...].astype(bf16), w0l_ref[...],
                  preferred_element_type=jnp.float32)
    h0 = jnp.maximum(h0 + b0_ref[...], 0.0)                  # f32 bias + ReLU

    h1 = jnp.dot(h0.astype(bf16), w1_ref[...],
                 preferred_element_type=jnp.float32)
    h1 = jnp.maximum(h1 + b1_ref[...], 0.0)                  # f32 bias + ReLU

    out = jnp.dot(h1.astype(bf16), w2_ref[...],
                  preferred_element_type=jnp.float32) + b2_ref[...]
    o_ref[...] = out.astype(o_ref.dtype)                     # lane-dense store


def mlp_ft_head(cls_tok, in_deg, out_deg, length, params, *, block_b=512):
    """Run the fused Pallas MLP head.

    cls_tok: [B, H]   in_deg/out_deg/length: [B, D]
    """
    w0, b0 = params["w0"], params["b0"]
    w1, b1 = params["w1"], params["b1"]
    w2, b2 = params["w2"], params["b2"]

    B, H = cls_tok.shape
    D = in_deg.shape[1]
    out_dim = w2.shape[1]

    # Lane-dense output: pad the final layer to a 128-wide slab (zero columns),
    # slice the real columns back out after the kernel.
    out_pad = _round_up(max(out_dim, 128), 128)
    w2p = jnp.pad(w2, ((0, 0), (0, out_pad - out_dim)))
    b2p = jnp.pad(b2, ((0, 0), (0, out_pad - out_dim)))

    # bf16 MXU operands (accumulate + epilogue stay f32 inside the kernel).
    bf16 = jnp.bfloat16
    w0h = w0[:H].astype(bf16)
    w0i = w0[H:H + D].astype(bf16)
    w0o = w0[H + D:H + 2 * D].astype(bf16)
    w0l = w0[H + 2 * D:H + 3 * D].astype(bf16)
    w1b = w1.astype(bf16)
    w2b = w2p.astype(bf16)

    # Batch tiling: tile is a multiple of 8, B padded up to a tile multiple.
    tm = min(block_b, _round_up(B, 8))
    Bp = _round_up(B, tm)
    if Bp != B:
        pad = ((0, Bp - B), (0, 0))
        cls_tok = jnp.pad(cls_tok, pad)
        in_deg = jnp.pad(in_deg, pad)
        out_deg = jnp.pad(out_deg, pad)
        length = jnp.pad(length, pad)

    def xspec(cols):
        return pl.BlockSpec((tm, cols), lambda i: (i, 0))

    def wspec(arr):
        # Full-array block, constant index_map: stays resident in VMEM across
        # all batch grid steps (no re-DMA of the tiny weights).
        return pl.BlockSpec(arr.shape, lambda i: (0, 0))

    out = pl.pallas_call(
        _mlp_kernel,
        out_shape=jax.ShapeDtypeStruct((Bp, out_pad), jnp.float32),
        grid=(Bp // tm,),
        in_specs=[
            xspec(H), xspec(D), xspec(D), xspec(D),
            wspec(w0h), wspec(w0i), wspec(w0o), wspec(w0l), wspec(b0),
            wspec(w1b), wspec(b1), wspec(w2b), wspec(b2p),
        ],
        out_specs=pl.BlockSpec((tm, out_pad), lambda i: (i, 0)),
        compiler_params=pltpu.CompilerParams(
            # Batch axis is data-parallel -> shards across both TCs on v7x.
            dimension_semantics=("parallel",)),
    )(cls_tok, in_deg, out_deg, length,
      w0h, w0i, w0o, w0l, b0, w1b, b1, w2b, b2p)

    return out[:B, :out_dim]


def mlp_ft_forward(sample, params):
    """Full MLP_FT.forward equivalent (eval mode).

    sample:
      'hidden_states' : [B, S, H]  -- base_model(...).last_hidden_state (synthetic)
      'in_degree'     : [B, D]
      'out_degree'    : [B, D]
      'length'        : [B, D]
    """
    cls_tok = sample["hidden_states"][:, 0, :]       # CLS token, [B, H]
    # self.dropout(x) -> identity in eval mode
    return mlp_ft_head(cls_tok, sample["in_degree"], sample["out_degree"],
                       sample["length"], params)


def init_params(key, input_size, n0, n1, output_size):
    """Deterministic parameter init mirroring MLP_FT.MLP with
    params = {n_layers: 2, n_0_size: n0, n_1_size: n1, ...}."""
    ks = jax.random.split(key, 6)

    def linear(kw, kb, fan_in, fan_out):
        bound = 1.0 / jnp.sqrt(fan_in)
        w = jax.random.uniform(kw, (fan_in, fan_out), jnp.float32, -bound, bound)
        b = jax.random.uniform(kb, (1, fan_out), jnp.float32, -bound, bound)
        return w, b

    w0, b0 = linear(ks[0], ks[1], input_size, n0)
    w1, b1 = linear(ks[2], ks[3], n0, n1)
    w2, b2 = linear(ks[4], ks[5], n1, output_size)
    return {"w0": w0, "b0": b0, "w1": w1, "b1": b1, "w2": w2, "b2": b2}


if __name__ == "__main__":
    key = jax.random.PRNGKey(0)
    k_hid, k_in, k_out, k_len, k_par = jax.random.split(key, 5)

    B, S, H = 2, 8, 32         # batch, seq, base-model hidden size
    D = 8                      # per-feature width of in/out-degree and length
    input_size = H + 3 * D     # 56, matches params['input_size']
    n0, n1, output_size = 64, 32, 4

    sample = {
        "hidden_states": jax.random.normal(k_hid, (B, S, H), jnp.float32),
        "in_degree":     jax.random.normal(k_in,  (B, D), jnp.float32),
        "out_degree":    jax.random.normal(k_out, (B, D), jnp.float32),
        "length":        jax.random.normal(k_len, (B, D), jnp.float32),
    }
    params = init_params(k_par, input_size, n0, n1, output_size)

    out = mlp_ft_forward(sample, params)
    out = jax.block_until_ready(out)
    assert out.shape == (B, output_size)

    # Reference with matching bf16-operand / f32-accumulate matmul semantics.
    x_cat = jnp.concatenate(
        (sample["hidden_states"][:, 0, :], sample["in_degree"],
         sample["out_degree"], sample["length"]), axis=1)
    bf = lambda a: a.astype(jnp.bfloat16)
    h = jnp.maximum(jnp.dot(bf(x_cat), bf(params["w0"]),
                            preferred_element_type=jnp.float32) + params["b0"], 0.0)
    h = jnp.maximum(jnp.dot(bf(h), bf(params["w1"]),
                            preferred_element_type=jnp.float32) + params["b1"], 0.0)
    ref_bf16 = jnp.dot(bf(h), bf(params["w2"]),
                       preferred_element_type=jnp.float32) + params["b2"]
    assert jnp.allclose(out, ref_bf16, atol=1e-3, rtol=1e-3)

    # Pure-f32 reference of the module semantics (loose tolerance: bf16 MXU inputs).
    hf = jnp.maximum(x_cat @ params["w0"] + params["b0"], 0.0)
    hf = jnp.maximum(hf @ params["w1"] + params["b1"], 0.0)
    ref_f32 = hf @ params["w2"] + params["b2"]
    assert jnp.allclose(out, ref_f32, atol=5e-2, rtol=5e-2)

    print("KERNEL_OK")
</pallas_src>

<mosaic_0001>
module attributes {stable_mosaic.version = 11 : i64} {
  func.func @_mlp_kernel(%arg0: i32, %arg1: memref<8x32xf32, #tpu.memory_space<vmem>>, %arg2: memref<8x8xf32, #tpu.memory_space<vmem>>, %arg3: memref<8x8xf32, #tpu.memory_space<vmem>>, %arg4: memref<8x8xf32, #tpu.memory_space<vmem>>, %arg5: memref<32x64xbf16, #tpu.memory_space<vmem>>, %arg6: memref<8x64xbf16, #tpu.memory_space<vmem>>, %arg7: memref<8x64xbf16, #tpu.memory_space<vmem>>, %arg8: memref<8x64xbf16, #tpu.memory_space<vmem>>, %arg9: memref<1x64xf32, #tpu.memory_space<vmem>>, %arg10: memref<64x32xbf16, #tpu.memory_space<vmem>>, %arg11: memref<1x32xf32, #tpu.memory_space<vmem>>, %arg12: memref<32x128xbf16, #tpu.memory_space<vmem>>, %arg13: memref<1x128xf32, #tpu.memory_space<vmem>>, %arg14: memref<8x128xf32, #tpu.memory_space<vmem>>) attributes {dimension_semantics = [#tpu.dimension_semantics<parallel>], iteration_bounds = array<i64: 1>, scalar_prefetch = 0 : i64, scratch_operands = 0 : i64, tpu.core_type = #tpu.core_type<tc>, window_params = [{transform_indices = @transform_0, window_bounds = array<i64: 8, 32>}, {transform_indices = @transform_1, window_bounds = array<i64: 8, 8>}, {transform_indices = @transform_2, window_bounds = array<i64: 8, 8>}, {transform_indices = @transform_3, window_bounds = array<i64: 8, 8>}, {pipeline_mode = #tpu.pipeline_mode<synchronous>, transform_indices = @transform_4, window_bounds = array<i64: 32, 64>}, {pipeline_mode = #tpu.pipeline_mode<synchronous>, transform_indices = @transform_5, window_bounds = array<i64: 8, 64>}, {pipeline_mode = #tpu.pipeline_mode<synchronous>, transform_indices = @transform_6, window_bounds = array<i64: 8, 64>}, {pipeline_mode = #tpu.pipeline_mode<synchronous>, transform_indices = @transform_7, window_bounds = array<i64: 8, 64>}, {pipeline_mode = #tpu.pipeline_mode<synchronous>, transform_indices = @transform_8, window_bounds = array<i64: 1, 64>}, {pipeline_mode = #tpu.pipeline_mode<synchronous>, transform_indices = @transform_9, window_bounds = array<i64: 64, 32>}, {pipeline_mode = #tpu.pipeline_mode<synchronous>, transform_indices = @transform_10, window_bounds = array<i64: 1, 32>}, {pipeline_mode = #tpu.pipeline_mode<synchronous>, transform_indices = @transform_11, window_bounds = array<i64: 32, 128>}, {pipeline_mode = #tpu.pipeline_mode<synchronous>, transform_indices = @transform_12, window_bounds = array<i64: 1, 128>}, {transform_indices = @transform_13, window_bounds = array<i64: 8, 128>}]} {
    %c0 = arith.constant 0 : index
    %c0_0 = arith.constant 0 : index
    %0 = vector.load %arg1[%c0, %c0_0] : memref<8x32xf32, #tpu.memory_space<vmem>>, vector<8x32xf32>
    %1 = arith.truncf %0 : vector<8x32xf32> to vector<8x32xbf16>
    %c0_1 = arith.constant 0 : index
    %c0_2 = arith.constant 0 : index
    %2 = vector.load %arg5[%c0_1, %c0_2] : memref<32x64xbf16, #tpu.memory_space<vmem>>, vector<32x64xbf16>
    %cst = arith.constant dense<0.000000e+00> : vector<8x64xf32>
    %3 = tpu.matmul %1, %2, %cst {dimension_numbers = #tpu.dot_dimension_numbers<[1], [0], [0], [1], [0, 0, 1, 1], [], []>} : vector<8x32xbf16>, vector<32x64xbf16>, vector<8x64xf32> -> vector<8x64xf32>
    %c0_3 = arith.constant 0 : index
    %c0_4 = arith.constant 0 : index
    %4 = vector.load %arg2[%c0_3, %c0_4] : memref<8x8xf32, #tpu.memory_space<vmem>>, vector<8x8xf32>
    %5 = arith.truncf %4 : vector<8x8xf32> to vector<8x8xbf16>
    %c0_5 = arith.constant 0 : index
    %c0_6 = arith.constant 0 : index
    %6 = vector.load %arg6[%c0_5, %c0_6] : memref<8x64xbf16, #tpu.memory_space<vmem>>, vector<8x64xbf16>
    %cst_7 = arith.constant dense<0.000000e+00> : vector<8x64xf32>
    %7 = tpu.matmul %5, %6, %cst_7 {dimension_numbers = #tpu.dot_dimension_numbers<[1], [0], [0], [1], [0, 0, 1, 1], [], []>} : vector<8x8xbf16>, vector<8x64xbf16>, vector<8x64xf32> -> vector<8x64xf32>
    %8 = arith.addf %3, %7 : vector<8x64xf32>
    %c0_8 = arith.constant 0 : index
    %c0_9 = arith.constant 0 : index
    %9 = vector.load %arg3[%c0_8, %c0_9] : memref<8x8xf32, #tpu.memory_space<vmem>>, vector<8x8xf32>
    %10 = arith.truncf %9 : vector<8x8xf32> to vector<8x8xbf16>
    %c0_10 = arith.constant 0 : index
    %c0_11 = arith.constant 0 : index
    %11 = vector.load %arg7[%c0_10, %c0_11] : memref<8x64xbf16, #tpu.memory_space<vmem>>, vector<8x64xbf16>
    %cst_12 = arith.constant dense<0.000000e+00> : vector<8x64xf32>
    %12 = tpu.matmul %10, %11, %cst_12 {dimension_numbers = #tpu.dot_dimension_numbers<[1], [0], [0], [1], [0, 0, 1, 1], [], []>} : vector<8x8xbf16>, vector<8x64xbf16>, vector<8x64xf32> -> vector<8x64xf32>
    %13 = arith.addf %8, %12 : vector<8x64xf32>
    %c0_13 = arith.constant 0 : index
    %c0_14 = arith.constant 0 : index
    %14 = vector.load %arg4[%c0_13, %c0_14] : memref<8x8xf32, #tpu.memory_space<vmem>>, vector<8x8xf32>
    %15 = arith.truncf %14 : vector<8x8xf32> to vector<8x8xbf16>
    %c0_15 = arith.constant 0 : index
    %c0_16 = arith.constant 0 : index
    %16 = vector.load %arg8[%c0_15, %c0_16] : memref<8x64xbf16, #tpu.memory_space<vmem>>, vector<8x64xbf16>
    %cst_17 = arith.constant dense<0.000000e+00> : vector<8x64xf32>
    %17 = tpu.matmul %15, %16, %cst_17 {dimension_numbers = #tpu.dot_dimension_numbers<[1], [0], [0], [1], [0, 0, 1, 1], [], []>} : vector<8x8xbf16>, vector<8x64xbf16>, vector<8x64xf32> -> vector<8x64xf32>
    %18 = arith.addf %13, %17 : vector<8x64xf32>
    %c0_18 = arith.constant 0 : index
    %c0_19 = arith.constant 0 : index
    %19 = vector.load %arg9[%c0_18, %c0_19] : memref<1x64xf32, #tpu.memory_space<vmem>>, vector<1x64xf32>
    %20 = vector.broadcast %19 : vector<1x64xf32> to vector<8x64xf32>
    %21 = arith.addf %18, %20 : vector<8x64xf32>
    %cst_20 = arith.constant 0.000000e+00 : f32
    %22 = vector.broadcast %cst_20 : f32 to vector<8x64xf32>
    %23 = arith.maximumf %21, %22 : vector<8x64xf32>
    %24 = arith.truncf %23 : vector<8x64xf32> to vector<8x64xbf16>
    %c0_21 = arith.constant 0 : index
    %c0_22 = arith.constant 0 : index
    %25 = vector.load %arg10[%c0_21, %c0_22] : memref<64x32xbf16, #tpu.memory_space<vmem>>, vector<64x32xbf16>
    %cst_23 = arith.constant dense<0.000000e+00> : vector<8x32xf32>
    %26 = tpu.matmul %24, %25, %cst_23 {dimension_numbers = #tpu.dot_dimension_numbers<[1], [0], [0], [1], [0, 0, 1, 1], [], []>} : vector<8x64xbf16>, vector<64x32xbf16>, vector<8x32xf32> -> vector<8x32xf32>
    %c0_24 = arith.constant 0 : index
    %c0_25 = arith.constant 0 : index
    %27 = vector.load %arg11[%c0_24, %c0_25] : memref<1x32xf32, #tpu.memory_space<vmem>>, vector<1x32xf32>
    %28 = vector.broadcast %27 : vector<1x32xf32> to vector<8x32xf32>
    %29 = arith.addf %26, %28 : vector<8x32xf32>
    %cst_26 = arith.constant 0.000000e+00 : f32
    %30 = vector.broadcast %cst_26 : f32 to vector<8x32xf32>
    %31 = arith.maximumf %29, %30 : vector<8x32xf32>
    %32 = arith.truncf %31 : vector<8x32xf32> to vector<8x32xbf16>
    %c0_27 = arith.constant 0 : index
    %c0_28 = arith.constant 0 : index
    %33 = vector.load %arg12[%c0_27, %c0_28] : memref<32x128xbf16, #tpu.memory_space<vmem>>, vector<32x128xbf16>
    %cst_29 = arith.constant dense<0.000000e+00> : vector<8x128xf32>
    %34 = tpu.matmul %32, %33, %cst_29 {dimension_numbers = #tpu.dot_dimension_numbers<[1], [0], [0], [1], [0, 0, 1, 1], [], []>} : vector<8x32xbf16>, vector<32x128xbf16>, vector<8x128xf32> -> vector<8x128xf32>
    %c0_30 = arith.constant 0 : index
    %c0_31 = arith.constant 0 : index
    %35 = vector.load %arg13[%c0_30, %c0_31] : memref<1x128xf32, #tpu.memory_space<vmem>>, vector<1x128xf32>
    %36 = vector.broadcast %35 : vector<1x128xf32> to vector<8x128xf32>
    %37 = arith.addf %34, %36 : vector<8x128xf32>
    %c0_32 = arith.constant 0 : index
    %c0_33 = arith.constant 0 : index
    %38 = vector.load %arg14[%c0_32, %c0_33] : memref<8x128xf32, #tpu.memory_space<vmem>>, vector<8x128xf32>
    tpu.vector_store %arg14[%c0_32, %c0_33], %37 {strides = array<i32>} : memref<8x128xf32, #tpu.memory_space<vmem>>, vector<8x128xf32>,
    return
  }
  func.func @transform_0(%arg0: i32) -> (i32, i32) {
    %c0_i32 = arith.constant 0 : i32
    %c0_i32_0 = arith.constant 0 : i32
    return %arg0, %c0_i32 : i32, i32
  }
  func.func @transform_1(%arg0: i32) -> (i32, i32) {
    %c0_i32 = arith.constant 0 : i32
    %c0_i32_0 = arith.constant 0 : i32
    return %arg0, %c0_i32 : i32, i32
  }
  func.func @transform_2(%arg0: i32) -> (i32, i32) {
    %c0_i32 = arith.constant 0 : i32
    %c0_i32_0 = arith.constant 0 : i32
    return %arg0, %c0_i32 : i32, i32
  }
  func.func @transform_3(%arg0: i32) -> (i32, i32) {
    %c0_i32 = arith.constant 0 : i32
    %c0_i32_0 = arith.constant 0 : i32
    return %arg0, %c0_i32 : i32, i32
  }
  func.func @transform_4(%arg0: i32) -> (i32, i32) {
    %c0_i32 = arith.constant 0 : i32
    %c0_i32_0 = arith.constant 0 : i32
    %c0_i32_1 = arith.constant 0 : i32
    return %c0_i32, %c0_i32_0 : i32, i32
  }
  func.func @transform_5(%arg0: i32) -> (i32, i32) {
    %c0_i32 = arith.constant 0 : i32
    %c0_i32_0 = arith.constant 0 : i32
    %c0_i32_1 = arith.constant 0 : i32
    return %c0_i32, %c0_i32_0 : i32, i32
  }
  func.func @transform_6(%arg0: i32) -> (i32, i32) {
    %c0_i32 = arith.constant 0 : i32
    %c0_i32_0 = arith.constant 0 : i32
    %c0_i32_1 = arith.constant 0 : i32
    return %c0_i32, %c0_i32_0 : i32, i32
  }
  func.func @transform_7(%arg0: i32) -> (i32, i32) {
    %c0_i32 = arith.constant 0 : i32
    %c0_i32_0 = arith.constant 0 : i32
    %c0_i32_1 = arith.constant 0 : i32
    return %c0_i32, %c0_i32_0 : i32, i32
  }
  func.func @transform_8(%arg0: i32) -> (i32, i32) {
    %c0_i32 = arith.constant 0 : i32
    %c0_i32_0 = arith.constant 0 : i32
    %c0_i32_1 = arith.constant 0 : i32
    return %c0_i32, %c0_i32_0 : i32, i32
  }
  func.func @transform_9(%arg0: i32) -> (i32, i32) {
    %c0_i32 = arith.constant 0 : i32
    %c0_i32_0 = arith.constant 0 : i32
    %c0_i32_1 = arith.constant 0 : i32
    return %c0_i32, %c0_i32_0 : i32, i32
  }
  func.func @transform_10(%arg0: i32) -> (i32, i32) {
    %c0_i32 = arith.constant 0 : i32
    %c0_i32_0 = arith.constant 0 : i32
    %c0_i32_1 = arith.constant 0 : i32
    return %c0_i32, %c0_i32_0 : i32, i32
  }
  func.func @transform_11(%arg0: i32) -> (i32, i32) {
    %c0_i32 = arith.constant 0 : i32
    %c0_i32_0 = arith.constant 0 : i32
    %c0_i32_1 = arith.constant 0 : i32
    return %c0_i32, %c0_i32_0 : i32, i32
  }
  func.func @transform_12(%arg0: i32) -> (i32, i32) {
    %c0_i32 = arith.constant 0 : i32
    %c0_i32_0 = arith.constant 0 : i32
    %c0_i32_1 = arith.constant 0 : i32
    return %c0_i32, %c0_i32_0 : i32, i32
  }
  func.func @transform_13(%arg0: i32) -> (i32, i32) {
    %c0_i32 = arith.constant 0 : i32
    %c0_i32_0 = arith.constant 0 : i32
    return %arg0, %c0_i32 : i32, i32
  }
}

</mosaic_0001>

<bundles_post_ra>
// kernel: tpu_custom_call.1
= control target key start
LH: loop header
LB: loop body
LE: loop exit
PB: predicated region body
PF: predicated region fallthrough
CT: control target
= control target key end

     0   :  { %18 = vsyncpa [#allocation3], 0  ;;  %s860_s0 = inlined_call_operand.vmem [shape: f32[8,32], index: 0, kind: input, shape index: {}]   ;;  %s861_s1 = inlined_call_operand.vmem [shape: f32[8,8], index: 1, kind: input, shape index: {}]   ;;  %s862_s2 = inlined_call_operand.hbm [shape: f32[8,8], index: 2, kind: input, shape index: {}]   ;;  %s863_s3 = inlined_call_operand.vmem [shape: f32[8,8], index: 3, kind: input, shape index: {}]   ;;  %s864_s4 = inlined_call_operand.vmem [shape: bf16[32,64], index: 4, kind: input, shape index: {}]   ;;  %s865_s5 = inlined_call_operand.vmem [shape: bf16[8,64], index: 5, kind: input, shape index: {}]   ;;  %s866_s6 = inlined_call_operand.hbm [shape: bf16[8,64], index: 6, kind: input, shape index: {}]   ;;  %s867_s7 = inlined_call_operand.hbm [shape: bf16[8,64], index: 7, kind: input, shape index: {}]   ;;  %s868_s8 = inlined_call_operand.vmem [shape: f32[1,64], index: 8, kind: input, shape index: {}]   ;;  %s869_s9 = inlined_call_operand.vmem [shape: bf16[64,32], index: 9, kind: input, shape index: {}]   ;;  %s870_s10 = inlined_call_operand.vmem [shape: f32[1,32], index: 10, kind: input, shape index: {}]   ;;  %s871_s11 = inlined_call_operand.vmem [shape: bf16[32,128], index: 11, kind: input, shape index: {}]   ;;  %s872_s12 = inlined_call_operand.vmem [shape: f32[1,128], index: 12, kind: input, shape index: {}]   ;;  %s873_s13 = inlined_call_operand.hbm [shape: f32[8,128], index: 13, kind: output, shape index: {}]  }
   0x1   :  { %19 = vsyncpa [#allocation6], 0 }
   0x2   :  { %20 = vsyncpa [#allocation4], 0  ;;  %s660_s25 = smov [#allocation5]   ;;  %s661_s27 = smov [#allocation2]  }
   0x3   :  { %s47_s26 = sshll.u32 %s660_s25, 4  ;;  %s31_s28 = sshll.u32 %s661_s27, 4  ;;  %s48_s26 = int_to_ptr.vmem [resolvable:$true] %s47_s26  ;;  %s32_s28 = int_to_ptr.vmem [resolvable:$true] %s31_s28 }
   0x4   :  { %s566_s14 = scalar_lea.hbm %s866_s6, 64 }
   0x5   :  { %p567_p0 = scmp.ne.s32.totalorder %s866_s6, %s566_s14  ;;  %p570_p1 = scmp.lt.u32.totalorder %s566_s14, %s866_s6 }
   0x7   :  { %p572_p2 = pnand %p570_p1, %p567_p0 }
   0x9   :  { %575 = shalt.err (!%p572_p2)
}
   0xa   :  { %s576_s19 = scalar_lea.vmem %s48_s26, 64  ;;  %p581_p4 = scmp.lt.s32.totalorder %s48_s26, %s48_s26 }
   0xb   :  { %p577_p3 = scmp.ne.s32.totalorder %s48_s26, %s576_s19  ;;  %p582_p5 = scmp.lt.s32.totalorder %s576_s19, %s576_s19 }
   0xd   :  { %p583_p6 = por %p582_p5, %p581_p4 }
   0xf   :  { %p584_p7 = pnand %p583_p6, %p577_p3 }
  0x11   :  { %587 = shalt.err (!%p584_p7)
}
  0x12   :  { %50 = dma.hbm_to_vmem [thread:$0]  %s866_s6, 64, %s48_s26, [#allocation6]  }
  0x13   :  { %s588_s24 = scalar_lea.hbm %s862_s2, 128 }
  0x14   :  { %p589_p8 = scmp.ne.s32.totalorder %s862_s2, %s588_s24  ;;  %p592_p9 = scmp.lt.u32.totalorder %s588_s24, %s862_s2 }
  0x16   :  { %p594_p10 = pnand %p592_p9, %p589_p8 }
  0x18   :  { %597 = shalt.err (!%p594_p10)
}
  0x19   :  { %s598_s14 = scalar_lea.vmem %s32_s28, 128  ;;  %p603_p12 = scmp.lt.s32.totalorder %s32_s28, %s32_s28 }
  0x1a   :  { %p599_p11 = scmp.ne.s32.totalorder %s32_s28, %s598_s14  ;;  %p604_p13 = scmp.lt.s32.totalorder %s598_s14, %s598_s14 }
  0x1c   :  { %p605_p0 = por %p604_p13, %p603_p12 }
  0x1e   :  { %p606_p1 = pnand %p605_p0, %p599_p11 }
  0x20   :  { %609 = shalt.err (!%p606_p1)
}
  0x21   :  { %34 = dma.hbm_to_vmem [thread:$0]  %s862_s2, 128, %s32_s28, [#allocation3]  }
  0x22   :  { %s662_s15 = smov [#allocation7]   ;;  %s610_s19 = scalar_lea.hbm %s867_s7, 64 }
  0x23   :  { %s57_s16 = sshll.u32 %s662_s15, 4  ;;  %p611_p2 = scmp.ne.s32.totalorder %s867_s7, %s610_s19  ;;  %s58_s16 = int_to_ptr.vmem [resolvable:$true] %s57_s16 }
  0x24   :  { %p614_p3 = scmp.lt.u32.totalorder %s610_s19, %s867_s7 }
  0x26   :  { %p616_p4 = pnand %p614_p3, %p611_p2 }
  0x28   :  { %619 = shalt.err (!%p616_p4)
}
  0x29   :  { %s620_s24 = scalar_lea.vmem %s58_s16, 64  ;;  %p625_p6 = scmp.lt.s32.totalorder %s58_s16, %s58_s16 }
  0x2a   :  { %p621_p5 = scmp.ne.s32.totalorder %s58_s16, %s620_s24  ;;  %p626_p7 = scmp.lt.s32.totalorder %s620_s24, %s620_s24 }
  0x2c   :  { %p627_p8 = por %p626_p7, %p625_p6 }
  0x2e   :  { %p628_p9 = pnand %p627_p8, %p621_p5 }
  0x30   :  { %631 = shalt.err (!%p628_p9)
}
  0x31   :  { %60 = dma.hbm_to_vmem [thread:$0]  %s867_s7, 64, %s58_s16, [#allocation6]  }
  0x32   :  { %654 = dma.done.wait [#allocation3], 128  }
  0x33   :  { %655 = vsyncadd [#allocation3], 4294967168 }
  0x34   :  { %656 = dma.done.wait [#allocation6], 128  }
  0x35   :  { %657 = vsyncadd [#allocation6], 4294967168  ;;  %v663_v0 = vmov 0.0   ;;  %vm664_vm0 = vmmov 0   ;;  %vm94_vm1 = vcmask 1043456   ;;  %v558_v3 = vld [vmem:[%s864_s4] sm:$0xff]  }
  0x36   :  { %506 = vmatprep.subr.bf16.mxu0 %v663_v0  ;;  %512 = vmatprep.subr.bf16.mxu1 %v663_v0  ;;  %v89_v1 = vld [vmem:[%s865_s5] sm:$0xf]  ;;  %vm90_vm2 = vcmask 64512   ;;  %v196_v6 = vld [vmem:[#allocation5] sm:$0xf]  ;;  %vm150_vm3 = vcmask 261120  }
  0x37   :  { %508 = vmatprep.mubr.msk.bf16.mxu0 %vm664_vm0, %v663_v0  ;;  %516 = vmatprep.mubr.msk.bf16.mxu1 %vm664_vm0, %v663_v0  ;;  %v96_v2 = vsel %vm94_vm1, %v89_v1, 0  ;;  %v87_v4 = vld [vmem:[%s861_s1] sm:$0xff]  ;;  %v559_v7 = vld [vmem:[%s864_s4 + $0x8] sm:$0xff]   ;;  %v201_v8 = vsel %vm94_vm1, %v196_v6, 0  ;;  %v562_v19 = vld [vmem:[%s869_s9 + $0x10] sm:$0xff]   ;;  %vm343_vm4 = vcmask 523264  }
  0x38   :  { %507 = vmatpush3.bf16.msra.mxu0 %v96_v2  ;;  %v88_v5 = vpack.c.bf16 %v87_v4, %v87_v4  ;;  %513 = vmatpush3.bf16.msra.mxu1 %v558_v3  ;;  %v81_v9 = vld [vmem:[%s860_s0] sm:$0xff]  ;;  %v246_v10 = vld [vmem:[#allocation7] sm:$0xf]  ;;  %v563_v20 = vld [vmem:[%s869_s9 + $0x18] sm:$0xff]   ;;  %s665_s29 = smov [#allocation8]  }
  0x39   :  { %520 = vmatprep.subr.bf16.mxu0 %v663_v0  ;;  %514 = vmatprep.subr.bf16.mxu1 %v663_v0  ;;  %v194_v11 = vld [vmem:[#allocation2] sm:$0xff]  ;;  %v82_v12 = vpack.c.bf16 %v81_v9, %v81_v9  ;;  %v251_v13 = vsel %vm94_vm1, %v246_v10, 0  ;;  %v561_v18 = vld [vmem:[%s869_s9 + $0x8] sm:$0xff]  }
  0x3a   :  { %v195_v14 = vpack.c.bf16 %v194_v11, %v194_v11  ;;  %v244_v15 = vld [vmem:[%s863_s3] sm:$0xff]  ;;  %v565_v45 = vld [vmem:[%s871_s11 + $0x8] sm:$0xff]  }
  0x3b   :  { %509 = vmatmul.mubr.msk.bf16.vlgmr.msra.gmra.mrb[0].mxu0 %vm90_vm2, %v88_v5  ;;  %v245_v16 = vpack.c.bf16 %v244_v15, %v244_v15  ;;  %v560_v17 = vld [vmem:[%s869_s9] sm:$0xff]  }
  0x3c   :  { %521 = vmatpush3.bf16.msra.mxu0 %v201_v8  ;;  %522 = vmatprep.mubr.msk.bf16.mxu0 %vm664_vm0, %v663_v0  ;;  %v478_v36 = vld [vmem:[%s868_s8] ss:$0 sm:$0xff] }
  0x3d   :  { %515 = vmatpush3.bf16.msra.mxu1 %v559_v7  ;;  %532 = vmatprep.subr.bf16.mxu0 %v663_v0  ;;  %v564_v44 = vld [vmem:[%s871_s11] sm:$0xff]   ;;  %s462_s11 = sshll.u32 %s665_s29, 4  ;;  %s463_s11 = int_to_ptr.vmem [resolvable:$true] %s462_s11 }
  0x3e   :  { %526 = vmatprep.subr.bf16.mxu1 %v663_v0  ;;  %v479_v46 = vld [vmem:[%s870_s10] ss:$0 sm:$0xff]  ;;  %s632_s10 = scalar_lea.vmem %s463_s11, 128  ;;  %p637_p11 = scmp.lt.s32.totalorder %s463_s11, %s463_s11 }
  0x3f   :  { %v485_v54 = vld [vmem:[%s872_s12] ss:$0 sm:$0xff]  ;;  %p633_p10 = scmp.ne.s32.totalorder %s463_s11, %s632_s10  ;;  %p638_p12 = scmp.lt.s32.totalorder %s632_s10, %s632_s10 }
  0x40   :  { %517 = vmatmul.mubr.msk.bf16.vlgmr.msra.gmra.mrb[0].mxu1 %vm150_vm3, %v82_v12 }
  0x41   :  { %527 = vmatpush3.bf16.msra.mxu1 %v251_v13  ;;  %528 = vmatprep.mubr.msk.bf16.mxu1 %vm664_vm0, %v663_v0  ;;  %p639_p13 = por %p638_p12, %p637_p11 }
  0x42   :  { %544 = vmatprep.subr.bf16.mxu1 %v663_v0 }
  0x43   :  { %523 = vmatmul.mubr.msk.bf16.vlgmr.msra.gmra.mrb[4].mxu0 %vm90_vm2, %v195_v14  ;;  %p640_p0 = pnand %p639_p13, %p633_p10 }
  0x44   :  { %540 = vmatprep.mubr.msk.bf16.mxu0 %vm664_vm0, %v663_v0  ;;  %533 = vmatpush3.bf16.msra.mxu0 %v560_v17 }
  0x45   :  { %534 = vmatprep.subr.bf16.mxu0 %v663_v0 }
  0x48   :  { %529 = vmatmul.mubr.msk.bf16.vlgmr.msra.gmra.mrb[4].mxu1 %vm90_vm2, %v245_v16  ;;  %535 = vmatpush3.bf16.msra.mxu0 %v561_v18 }
  0x49   :  { %548 = vmatprep.mubr.msk.bf16.mxu1 %vm664_vm0, %v663_v0  ;;  %536 = vmatprep.subr.bf16.mxu0 %v663_v0 }
  0x4a   :  { %545 = vmatpush3.bf16.msra.mxu1 %v564_v44 }
  0x4b   :  { %546 = vmatprep.subr.bf16.mxu1 %v663_v0 }
  0x4c   :  { %537 = vmatpush3.bf16.msra.mxu0 %v562_v19 }
  0x4d   :  { %538 = vmatprep.subr.bf16.mxu0 %v663_v0 }
  0x4e   :  { %547 = vmatpush3.bf16.msra.mxu1 %v565_v45 }
  0x50   :  { %539 = vmatpush3.bf16.msra.mxu0 %v563_v20 }
 0x10e   :  { %v132_v21 = vpop.f32.mrb[0].mxu0 }
 0x10f   :  { %v510_v22 = vpop.f32.mrb[1].mxu0 }
 0x110   :  { %v135_v23 = vpop.f32.mrb[2].mxu0 }
 0x111   :  { %v511_v24 = vpop.f32.mrb[3].mxu0 }
 0x113   :  { %v188_v25 = vpop.f32.mrb[0].mxu1 }
 0x114   :  { %v189_v26 = vadd.f32 %v188_v25, %v132_v21  ;;  %v518_v27 = vpop.f32.mrb[1].mxu1 }
 0x115   :  { %v191_v28 = vpop.f32.mrb[2].mxu1 }
 0x116   :  { %v519_v29 = vpop.f32.mrb[3].mxu1  ;;  %v237_v30 = vpop.f32.mrb[4].mxu0 }
 0x117   :  { %v243_v31 = vadd.f32 %v237_v30, %v189_v26  ;;  %v524_v32 = vpop.f32.mrb[5].mxu0 }
 0x118   :  { %v240_v33 = vpop.f32.mrb[6].mxu0 }
 0x119   :  { %v525_v34 = vpop.f32.mrb[7].mxu0 }
 0x11b   :  { %v287_v35 = vpop.f32.mrb[4].mxu1 }
 0x11c   :  { %v293_v37 = vadd.f32 %v287_v35, %v243_v31  ;;  %v530_v38 = vpop.f32.mrb[5].mxu1 }
 0x11d   :  { %v290_v39 = vpop.f32.mrb[6].mxu1 }
 0x11e   :  { %v301_v40 = vadd.f32 %v478_v36, %v293_v37  ;;  %v531_v41 = vpop.f32.mrb[7].mxu1 }
 0x120   :  { %v302_v42 = vmax.f32 %v301_v40, 0.0 }
 0x122   :  { %v303_v43 = vpack.c.bf16 %v302_v42, %v302_v42 }
 0x124   :  { %541 = vmatmul.mubr.msk.bf16.vlgmr.msra.gmra.mrb[8].mxu0 %vm343_vm4, %v303_v43 }
 0x1f7   :  { %v381_v47 = vpop.f32.mrb[8].mxu0 }
 0x1f8   :  { %v382_v48 = vadd.f32 %v479_v46, %v381_v47  ;;  %v542_v49 = vpop.f32.mrb[9].mxu0 }
 0x1f9   :  { %v384_v50 = vpop.f32.mrb[10].mxu0 }
 0x1fa   :  { %v387_v51 = vmax.f32 %v382_v48, 0.0  ;;  %v543_v52 = vpop.f32.mrb[11].mxu0 }
 0x1fc   :  { %v388_v53 = vpack.c.bf16 %v387_v51, %v387_v51 }
 0x1fe   :  { %549 = vmatmul.mubr.msk.bf16.vlgmr.msra.gmra.mrb[8].mxu1 %vm150_vm3, %v388_v53 }
 0x2d1   :  { %v449_v55 = vpop.f32.mrb[8].mxu1 }
 0x2d2   :  { %v450_v56 = vadd.f32 %v485_v54, %v449_v55  ;;  %v550_v57 = vpop.f32.mrb[9].mxu1 }
 0x2d3   :  { %v452_v58 = vpop.f32.mrb[10].mxu1 }
 0x2d4   :  { %455 = vst [vmem:[#allocation8] sm:$0xff] %v450_v56  ;;  %v551_v59 = vpop.f32.mrb[11].mxu1 }
 0x2d5   :  { %643 = shalt.err (!%p640_p0)
}
 0x2d6   :  { %s644_s12 = scalar_lea.hbm %s873_s13, 128 }
 0x2d7   :  { %p645_p1 = scmp.ne.s32.totalorder %s873_s13, %s644_s12  ;;  %p648_p2 = scmp.lt.u32.totalorder %s644_s12, %s873_s13 }
 0x2d9   :  { %p650_p3 = pnand %p648_p2, %p645_p1 }
 0x2db   :  { %653 = shalt.err (!%p650_p3)
}
 0x2dc   :  { %465 = dma.vmem_to_hbm [thread:$0]  %s463_s11, 128, %s873_s13, [#allocation4]  }
 0x2dd   :  { %658 = dma.done.wait [#allocation4], 128  }
 0x2de   :  { %659 = vsyncadd [#allocation4], 4294967168 }
 0x2df   :  { %469 = vsyncpa [#allocation3], 1 }
 0x2e0   :  { %470 = vsyncpa [#allocation6], 1 }
 0x2e1   :  { %471 = vsyncpa [#allocation4], 1 }

</bundles_post_ra>
